<compile_context>
chip_gen: v7x
topology: tpu7x:2x2x1
jax: 0.10.0
libtpu: 0.0.40
codegen_flags: <defaults>
</compile_context>

<pallas_src>
import functools

import jax
import jax.numpy as jnp
from jax.experimental import pallas as pl
from jax.experimental.pallas import tpu as pltpu

LANES = 128
SUBLANES = 8


def _cdiv(a, b):
    return -(-a // b)


def _round_up(a, b):
    return _cdiv(a, b) * b


# ----------------------------- Pallas kernel --------------------------------

def _layernorm(x, gamma, beta, eps=1e-5):
    """LayerNorm with MXU-offloaded row sums.

    var = E[x^2] - mu^2: both sums depend only on x (no serial
    reduce -> center -> reduce chain) and are computed as x @ ones((n, 1)),
    so the reduction work lands on the (otherwise idle) MXU instead of the
    XLU, which was the binding VLIW slot at H = 32 / 16 useful lanes.
    """
    n = x.shape[-1]
    ones_col = jnp.ones((n, 1), jnp.float32)
    inv_n = 1.0 / n
    s1 = jnp.dot(x, ones_col, preferred_element_type=jnp.float32)       # (tb, 1)
    s2 = jnp.dot(x * x, ones_col, preferred_element_type=jnp.float32)   # (tb, 1)
    mu = s1 * inv_n
    var = jnp.maximum(s2 * inv_n - mu * mu, 0.0)   # clamp tiny negative cancellation
    return (x - mu) * jax.lax.rsqrt(var + eps) * gamma + beta


def _forward_one(x, w1_ref, w2_ref, w3_ref, wh_ref, v12_ref, v3_ref, bh_ref):
    """feature_extractor + head (pre-activation) for one network."""
    v12 = v12_ref[...]   # (6, H):  rows = b1, g1, be1, b2, g2, be2
    v3 = v3_ref[...]     # (3, H2): rows = b3, g3, be3

    # Block 1: Linear -> LayerNorm -> ReLU -> Dropout (eval => identity)
    h = jnp.dot(x, w1_ref[...], preferred_element_type=jnp.float32) + v12[0:1]
    h = jnp.maximum(_layernorm(h, v12[1:2], v12[2:3]), 0.0)

    # Block 2: Linear -> LayerNorm -> ReLU -> Dropout (eval => identity)
    h = jnp.dot(h, w2_ref[...], preferred_element_type=jnp.float32) + v12[3:4]
    h = jnp.maximum(_layernorm(h, v12[4:5], v12[5:6]), 0.0)

    # Block 3: Linear -> LayerNorm -> ReLU
    h = jnp.dot(h, w3_ref[...], preferred_element_type=jnp.float32) + v3[0:1]
    h = jnp.maximum(_layernorm(h, v3[1:2], v3[2:3]), 0.0)

    # Head: lane-narrow (out_dim) output, NO padded store.
    return jnp.dot(h, wh_ref[...], preferred_element_type=jnp.float32) + bh_ref[...]


def _mappo_kernel(obs_ref, *refs, is_critic_flags):
    n_nets = len(is_critic_flags)
    x = obs_ref[...].astype(jnp.float32)
    net_refs = refs[: 7 * n_nets]
    out_refs = refs[7 * n_nets:]
    for n, is_critic in enumerate(is_critic_flags):
        w1, w2, w3, wh, v12, v3, bh = net_refs[7 * n: 7 * (n + 1)]
        o = _forward_one(x, w1, w2, w3, wh, v12, v3, bh)
        if is_critic:
            out_refs[n][...] = o                    # value head: raw linear output
        else:
            out_refs[n][...] = jax.nn.sigmoid(o)    # MultiBinary actor: sigmoid(logits)
    # TODO(synk): MultiDiscrete actor head (per-head log_softmax concat) not
    # implemented; only the MultiBinary / critic variants are built here.


# ----------------------------- wrapper ---------------------------------------

def mappo_forward_fused(obs, nets, *, block_batch=1024):
    """Run several MAPPONetwork forward passes sharing `obs` in ONE kernel.

    obs:  [B, obs_dim] float32.
    nets: sequence of (params, is_critic) tuples (see init_params).
    Returns a tuple of [B, out_dim_i] float32 outputs, one per network.
    """
    B, obs_dim = obs.shape

    # Batch tiling: big tiles, minimal pad waste, >=2 tiles for v7x megacore.
    tb_cap = max(SUBLANES, (block_batch // SUBLANES) * SUBLANES)
    n_tiles = _cdiv(B, tb_cap)
    if n_tiles == 1 and B > SUBLANES:
        n_tiles = 2            # let ("parallel",) shard tiles across 2 TCs on v7x
    tb = _round_up(_cdiv(B, n_tiles), SUBLANES)
    b_pad = _round_up(B, tb)
    grid = (b_pad // tb,)
    if b_pad != B:
        obs = jnp.pad(obs, ((0, b_pad - B), (0, 0)))

    def resident(arr):
        # Whole array as one block with a constant index_map: DMA'd into VMEM
        # once, stays resident across all batch tiles.
        return pl.BlockSpec(arr.shape, lambda i: (0, 0))

    inputs = [obs]
    in_specs = [pl.BlockSpec((tb, obs_dim), lambda i: (i, 0))]   # batch-tiled obs
    out_shapes = []
    out_specs = []
    is_critic_flags = []

    flops = 0
    transcendentals = 0
    bytes_accessed = b_pad * obs_dim * 4

    for params, is_critic in nets:
        w1, w2, w3 = params["w1"], params["w2"], params["w3"]
        wh, bh = params["wh"], params["bh"]
        H, H2, out_dim = w1.shape[1], w3.shape[1], wh.shape[1]

        # Pack the 10 tiny per-layer vectors into 3 inputs (fewer DMA descriptors).
        vec12 = jnp.concatenate([params["b1"], params["g1"], params["be1"],
                                 params["b2"], params["g2"], params["be2"]], axis=0)
        vec3 = jnp.concatenate([params["b3"], params["g3"], params["be3"]], axis=0)

        arrs = [w1, w2, w3, wh, vec12, vec3, bh]
        inputs.extend(arrs)
        in_specs.extend(resident(a) for a in arrs)

        out_shapes.append(jax.ShapeDtypeStruct((b_pad, out_dim), jnp.float32))
        out_specs.append(pl.BlockSpec((tb, out_dim), lambda i: (i, 0)))
        is_critic_flags.append(bool(is_critic))

        flops += 2 * b_pad * (obs_dim * H + H * H + H * H2 + H2 * out_dim)
        transcendentals += b_pad * (3 + (0 if is_critic else out_dim))
        bytes_accessed += 4 * (sum(int(a.size) for a in arrs) + b_pad * out_dim)

    kernel = functools.partial(_mappo_kernel,
                               is_critic_flags=tuple(is_critic_flags))

    outs = pl.pallas_call(
        kernel,
        out_shape=tuple(out_shapes),
        grid_spec=pl.GridSpec(
            grid=grid,
            in_specs=in_specs,
            out_specs=tuple(out_specs),
        ),
        compiler_params=pltpu.CompilerParams(
            dimension_semantics=("parallel",)),      # v7x: shard tiles over 2 TCs
        cost_estimate=pl.CostEstimate(
            flops=int(flops),
            transcendentals=int(transcendentals),
            bytes_accessed=int(bytes_accessed)),
    )(*inputs)

    return tuple(o[:B] for o in outs)


def mappo_forward(obs, params, *, is_critic, block_batch=1024):
    """Single-network convenience wrapper."""
    return mappo_forward_fused(obs, [(params, is_critic)],
                               block_batch=block_batch)[0]


# ----------------------------- parameter init --------------------------------

def _xavier_uniform(key, fan_in, fan_out):
    bound = (6.0 / (fan_in + fan_out)) ** 0.5
    # stored as [in, out] so the kernel computes x @ W
    return jax.random.uniform(key, (fan_in, fan_out), jnp.float32, -bound, bound)


def init_params(key, obs_dim, hidden_dim, out_dim):
    """Matches MAPPONetwork.__init__ shapes with xavier-uniform weights,
    zero biases, LayerNorm weight=1 / bias=0 (PyTorch defaults)."""
    h, h2 = hidden_dim, hidden_dim // 2
    k1, k2, k3, k4 = jax.random.split(key, 4)
    return {
        "w1": _xavier_uniform(k1, obs_dim, h),
        "b1": jnp.zeros((1, h), jnp.float32),
        "g1": jnp.ones((1, h), jnp.float32),
        "be1": jnp.zeros((1, h), jnp.float32),
        "w2": _xavier_uniform(k2, h, h),
        "b2": jnp.zeros((1, h), jnp.float32),
        "g2": jnp.ones((1, h), jnp.float32),
        "be2": jnp.zeros((1, h), jnp.float32),
        "w3": _xavier_uniform(k3, h, h2),
        "b3": jnp.zeros((1, h2), jnp.float32),
        "g3": jnp.ones((1, h2), jnp.float32),
        "be3": jnp.zeros((1, h2), jnp.float32),
        "wh": _xavier_uniform(k4, h2, out_dim),
        "bh": jnp.zeros((1, out_dim), jnp.float32),
    }


# ----------------------------- reference (plain JAX) -------------------------

def _ref_forward(obs, p, is_critic):
    def ln(x, g, b, eps=1e-5):
        mu = x.mean(-1, keepdims=True)
        var = ((x - mu) ** 2).mean(-1, keepdims=True)
        return (x - mu) / jnp.sqrt(var + eps) * g + b
    h = jnp.maximum(ln(obs @ p["w1"] + p["b1"], p["g1"], p["be1"]), 0.0)
    h = jnp.maximum(ln(h @ p["w2"] + p["b2"], p["g2"], p["be2"]), 0.0)
    h = jnp.maximum(ln(h @ p["w3"] + p["b3"], p["g3"], p["be3"]), 0.0)
    o = h @ p["wh"] + p["bh"]
    return o if is_critic else jax.nn.sigmoid(o)


# ----------------------------- main -------------------------------------------

if __name__ == "__main__":
    key = jax.random.PRNGKey(0)
    k_obs, k_actor, k_critic = jax.random.split(key, 3)

    batch = 8
    obs_dim = 16
    hidden_dim = 32      # small hidden; hidden_dim // 2 = 16
    n_actions = 6        # MultiBinary(n=6) actor head

    obs = jax.random.normal(k_obs, (batch, obs_dim), jnp.float32)

    actor_params = init_params(k_actor, obs_dim, hidden_dim, n_actions)
    critic_params = init_params(k_critic, obs_dim, hidden_dim, 1)

    # Single fused kernel launch evaluating actor + critic on the shared obs.
    actor_out, critic_out = mappo_forward_fused(
        obs, [(actor_params, False), (critic_params, True)])
    actor_out = jax.block_until_ready(actor_out)
    critic_out = jax.block_until_ready(critic_out)

    # Sanity check against plain-JAX reference.
    ref_a = _ref_forward(obs, actor_params, False)
    ref_c = _ref_forward(obs, critic_params, True)
    assert actor_out.shape == (batch, n_actions)
    assert critic_out.shape == (batch, 1)
    assert jnp.allclose(actor_out, ref_a, atol=1e-4, rtol=1e-4)
    assert jnp.allclose(critic_out, ref_c, atol=1e-4, rtol=1e-4)

    print("KERNEL_OK")
</pallas_src>

<mosaic_0001>
module attributes {stable_mosaic.version = 11 : i64} {
  func.func @_mappo_kernel(%arg0: i32, %arg1: memref<8x16xf32, #tpu.memory_space<vmem>>, %arg2: memref<16x32xf32, #tpu.memory_space<vmem>>, %arg3: memref<32x32xf32, #tpu.memory_space<vmem>>, %arg4: memref<32x16xf32, #tpu.memory_space<vmem>>, %arg5: memref<16x6xf32, #tpu.memory_space<vmem>>, %arg6: memref<6x32xf32, #tpu.memory_space<vmem>>, %arg7: memref<3x16xf32, #tpu.memory_space<vmem>>, %arg8: memref<1x6xf32, #tpu.memory_space<vmem>>, %arg9: memref<16x32xf32, #tpu.memory_space<vmem>>, %arg10: memref<32x32xf32, #tpu.memory_space<vmem>>, %arg11: memref<32x16xf32, #tpu.memory_space<vmem>>, %arg12: memref<16x1xf32, #tpu.memory_space<vmem>>, %arg13: memref<6x32xf32, #tpu.memory_space<vmem>>, %arg14: memref<3x16xf32, #tpu.memory_space<vmem>>, %arg15: memref<1x1xf32, #tpu.memory_space<vmem>>, %arg16: memref<8x6xf32, #tpu.memory_space<vmem>>, %arg17: memref<8x1xf32, #tpu.memory_space<vmem>>) attributes {dimension_semantics = [#tpu.dimension_semantics<parallel>], iteration_bounds = array<i64: 1>, scalar_prefetch = 0 : i64, scratch_operands = 0 : i64, tpu.core_type = #tpu.core_type<tc>, window_params = [{transform_indices = @transform_0, window_bounds = array<i64: 8, 16>}, {pipeline_mode = #tpu.pipeline_mode<synchronous>, transform_indices = @transform_1, window_bounds = array<i64: 16, 32>}, {pipeline_mode = #tpu.pipeline_mode<synchronous>, transform_indices = @transform_2, window_bounds = array<i64: 32, 32>}, {pipeline_mode = #tpu.pipeline_mode<synchronous>, transform_indices = @transform_3, window_bounds = array<i64: 32, 16>}, {pipeline_mode = #tpu.pipeline_mode<synchronous>, transform_indices = @transform_4, window_bounds = array<i64: 16, 6>}, {pipeline_mode = #tpu.pipeline_mode<synchronous>, transform_indices = @transform_5, window_bounds = array<i64: 6, 32>}, {pipeline_mode = #tpu.pipeline_mode<synchronous>, transform_indices = @transform_6, window_bounds = array<i64: 3, 16>}, {pipeline_mode = #tpu.pipeline_mode<synchronous>, transform_indices = @transform_7, window_bounds = array<i64: 1, 6>}, {pipeline_mode = #tpu.pipeline_mode<synchronous>, transform_indices = @transform_8, window_bounds = array<i64: 16, 32>}, {pipeline_mode = #tpu.pipeline_mode<synchronous>, transform_indices = @transform_9, window_bounds = array<i64: 32, 32>}, {pipeline_mode = #tpu.pipeline_mode<synchronous>, transform_indices = @transform_10, window_bounds = array<i64: 32, 16>}, {pipeline_mode = #tpu.pipeline_mode<synchronous>, transform_indices = @transform_11, window_bounds = array<i64: 16, 1>}, {pipeline_mode = #tpu.pipeline_mode<synchronous>, transform_indices = @transform_12, window_bounds = array<i64: 6, 32>}, {pipeline_mode = #tpu.pipeline_mode<synchronous>, transform_indices = @transform_13, window_bounds = array<i64: 3, 16>}, {pipeline_mode = #tpu.pipeline_mode<synchronous>, transform_indices = @transform_14, window_bounds = array<i64: 1, 1>}, {transform_indices = @transform_15, window_bounds = array<i64: 8, 6>}, {transform_indices = @transform_16, window_bounds = array<i64: 8, 1>}]} {
    %c0 = arith.constant 0 : index
    %c0_0 = arith.constant 0 : index
    %0 = vector.load %arg1[%c0, %c0_0] : memref<8x16xf32, #tpu.memory_space<vmem>>, vector<8x16xf32>
    %c0_1 = arith.constant 0 : index
    %c0_2 = arith.constant 0 : index
    %1 = vector.load %arg6[%c0_1, %c0_2] : memref<6x32xf32, #tpu.memory_space<vmem>>, vector<6x32xf32>
    %c0_3 = arith.constant 0 : index
    %c0_4 = arith.constant 0 : index
    %2 = vector.load %arg7[%c0_3, %c0_4] : memref<3x16xf32, #tpu.memory_space<vmem>>, vector<3x16xf32>
    %c0_5 = arith.constant 0 : index
    %c0_6 = arith.constant 0 : index
    %3 = vector.load %arg2[%c0_5, %c0_6] : memref<16x32xf32, #tpu.memory_space<vmem>>, vector<16x32xf32>
    %cst = arith.constant dense<0.000000e+00> : vector<8x32xf32>
    %4 = tpu.matmul %0, %3, %cst {dimension_numbers = #tpu.dot_dimension_numbers<[1], [0], [0], [1], [0, 0, 1, 1], [], []>} : vector<8x16xf32>, vector<16x32xf32>, vector<8x32xf32> -> vector<8x32xf32>
    %5 = vector.extract_strided_slice %1 {offsets = [0, 0], sizes = [1, 32], strides = [1, 1]} : vector<6x32xf32> to vector<1x32xf32>
    %6 = vector.broadcast %5 : vector<1x32xf32> to vector<8x32xf32>
    %7 = arith.addf %4, %6 : vector<8x32xf32>
    %8 = vector.extract_strided_slice %1 {offsets = [1, 0], sizes = [1, 32], strides = [1, 1]} : vector<6x32xf32> to vector<1x32xf32>
    %9 = vector.extract_strided_slice %1 {offsets = [2, 0], sizes = [1, 32], strides = [1, 1]} : vector<6x32xf32> to vector<1x32xf32>
    %cst_7 = arith.constant 1.000000e+00 : f32
    %10 = vector.broadcast %cst_7 : f32 to vector<32x1xf32>
    %cst_8 = arith.constant dense<0.000000e+00> : vector<8x1xf32>
    %11 = tpu.matmul %7, %10, %cst_8 {dimension_numbers = #tpu.dot_dimension_numbers<[1], [0], [0], [1], [0, 0, 1, 1], [], []>} : vector<8x32xf32>, vector<32x1xf32>, vector<8x1xf32> -> vector<8x1xf32>
    %12 = arith.mulf %7, %7 : vector<8x32xf32>
    %cst_9 = arith.constant dense<0.000000e+00> : vector<8x1xf32>
    %13 = tpu.matmul %12, %10, %cst_9 {dimension_numbers = #tpu.dot_dimension_numbers<[1], [0], [0], [1], [0, 0, 1, 1], [], []>} : vector<8x32xf32>, vector<32x1xf32>, vector<8x1xf32> -> vector<8x1xf32>
    %cst_10 = arith.constant 3.125000e-02 : f32
    %14 = vector.broadcast %cst_10 : f32 to vector<8x1xf32>
    %15 = arith.mulf %11, %14 : vector<8x1xf32>
    %cst_11 = arith.constant 3.125000e-02 : f32
    %16 = vector.broadcast %cst_11 : f32 to vector<8x1xf32>
    %17 = arith.mulf %13, %16 : vector<8x1xf32>
    %18 = arith.mulf %15, %15 : vector<8x1xf32>
    %19 = arith.subf %17, %18 : vector<8x1xf32>
    %cst_12 = arith.constant 0.000000e+00 : f32
    %20 = vector.broadcast %cst_12 : f32 to vector<8x1xf32>
    %21 = arith.maximumf %19, %20 : vector<8x1xf32>
    %22 = vector.broadcast %15 : vector<8x1xf32> to vector<8x32xf32>
    %23 = arith.subf %7, %22 : vector<8x32xf32>
    %cst_13 = arith.constant 9.99999974E-6 : f32
    %24 = vector.broadcast %cst_13 : f32 to vector<8x1xf32>
    %25 = arith.addf %21, %24 : vector<8x1xf32>
    %26 = math.rsqrt %25 : vector<8x1xf32>
    %27 = vector.broadcast %26 : vector<8x1xf32> to vector<8x32xf32>
    %28 = arith.mulf %23, %27 : vector<8x32xf32>
    %29 = vector.broadcast %8 : vector<1x32xf32> to vector<8x32xf32>
    %30 = arith.mulf %28, %29 : vector<8x32xf32>
    %31 = vector.broadcast %9 : vector<1x32xf32> to vector<8x32xf32>
    %32 = arith.addf %30, %31 : vector<8x32xf32>
    %cst_14 = arith.constant 0.000000e+00 : f32
    %33 = vector.broadcast %cst_14 : f32 to vector<8x32xf32>
    %34 = arith.maximumf %32, %33 : vector<8x32xf32>
    %c0_15 = arith.constant 0 : index
    %c0_16 = arith.constant 0 : index
    %35 = vector.load %arg3[%c0_15, %c0_16] : memref<32x32xf32, #tpu.memory_space<vmem>>, vector<32x32xf32>
    %cst_17 = arith.constant dense<0.000000e+00> : vector<8x32xf32>
    %36 = tpu.matmul %34, %35, %cst_17 {dimension_numbers = #tpu.dot_dimension_numbers<[1], [0], [0], [1], [0, 0, 1, 1], [], []>} : vector<8x32xf32>, vector<32x32xf32>, vector<8x32xf32> -> vector<8x32xf32>
    %37 = vector.extract_strided_slice %1 {offsets = [3, 0], sizes = [1, 32], strides = [1, 1]} : vector<6x32xf32> to vector<1x32xf32>
    %38 = vector.broadcast %37 : vector<1x32xf32> to vector<8x32xf32>
    %39 = arith.addf %36, %38 : vector<8x32xf32>
    %40 = vector.extract_strided_slice %1 {offsets = [4, 0], sizes = [1, 32], strides = [1, 1]} : vector<6x32xf32> to vector<1x32xf32>
    %41 = vector.extract_strided_slice %1 {offsets = [5, 0], sizes = [1, 32], strides = [1, 1]} : vector<6x32xf32> to vector<1x32xf32>
    %cst_18 = arith.constant 1.000000e+00 : f32
    %42 = vector.broadcast %cst_18 : f32 to vector<32x1xf32>
    %cst_19 = arith.constant dense<0.000000e+00> : vector<8x1xf32>
    %43 = tpu.matmul %39, %42, %cst_19 {dimension_numbers = #tpu.dot_dimension_numbers<[1], [0], [0], [1], [0, 0, 1, 1], [], []>} : vector<8x32xf32>, vector<32x1xf32>, vector<8x1xf32> -> vector<8x1xf32>
    %44 = arith.mulf %39, %39 : vector<8x32xf32>
    %cst_20 = arith.constant dense<0.000000e+00> : vector<8x1xf32>
    %45 = tpu.matmul %44, %42, %cst_20 {dimension_numbers = #tpu.dot_dimension_numbers<[1], [0], [0], [1], [0, 0, 1, 1], [], []>} : vector<8x32xf32>, vector<32x1xf32>, vector<8x1xf32> -> vector<8x1xf32>
    %cst_21 = arith.constant 3.125000e-02 : f32
    %46 = vector.broadcast %cst_21 : f32 to vector<8x1xf32>
    %47 = arith.mulf %43, %46 : vector<8x1xf32>
    %cst_22 = arith.constant 3.125000e-02 : f32
    %48 = vector.broadcast %cst_22 : f32 to vector<8x1xf32>
    %49 = arith.mulf %45, %48 : vector<8x1xf32>
    %50 = arith.mulf %47, %47 : vector<8x1xf32>
    %51 = arith.subf %49, %50 : vector<8x1xf32>
    %cst_23 = arith.constant 0.000000e+00 : f32
    %52 = vector.broadcast %cst_23 : f32 to vector<8x1xf32>
    %53 = arith.maximumf %51, %52 : vector<8x1xf32>
    %54 = vector.broadcast %47 : vector<8x1xf32> to vector<8x32xf32>
    %55 = arith.subf %39, %54 : vector<8x32xf32>
    %cst_24 = arith.constant 9.99999974E-6 : f32
    %56 = vector.broadcast %cst_24 : f32 to vector<8x1xf32>
    %57 = arith.addf %53, %56 : vector<8x1xf32>
    %58 = math.rsqrt %57 : vector<8x1xf32>
    %59 = vector.broadcast %58 : vector<8x1xf32> to vector<8x32xf32>
    %60 = arith.mulf %55, %59 : vector<8x32xf32>
    %61 = vector.broadcast %40 : vector<1x32xf32> to vector<8x32xf32>
    %62 = arith.mulf %60, %61 : vector<8x32xf32>
    %63 = vector.broadcast %41 : vector<1x32xf32> to vector<8x32xf32>
    %64 = arith.addf %62, %63 : vector<8x32xf32>
    %cst_25 = arith.constant 0.000000e+00 : f32
    %65 = vector.broadcast %cst_25 : f32 to vector<8x32xf32>
    %66 = arith.maximumf %64, %65 : vector<8x32xf32>
    %c0_26 = arith.constant 0 : index
    %c0_27 = arith.constant 0 : index
    %67 = vector.load %arg4[%c0_26, %c0_27] : memref<32x16xf32, #tpu.memory_space<vmem>>, vector<32x16xf32>
    %cst_28 = arith.constant dense<0.000000e+00> : vector<8x16xf32>
    %68 = tpu.matmul %66, %67, %cst_28 {dimension_numbers = #tpu.dot_dimension_numbers<[1], [0], [0], [1], [0, 0, 1, 1], [], []>} : vector<8x32xf32>, vector<32x16xf32>, vector<8x16xf32> -> vector<8x16xf32>
    %69 = vector.extract_strided_slice %2 {offsets = [0, 0], sizes = [1, 16], strides = [1, 1]} : vector<3x16xf32> to vector<1x16xf32>
    %70 = vector.broadcast %69 : vector<1x16xf32> to vector<8x16xf32>
    %71 = arith.addf %68, %70 : vector<8x16xf32>
    %72 = vector.extract_strided_slice %2 {offsets = [1, 0], sizes = [1, 16], strides = [1, 1]} : vector<3x16xf32> to vector<1x16xf32>
    %73 = vector.extract_strided_slice %2 {offsets = [2, 0], sizes = [1, 16], strides = [1, 1]} : vector<3x16xf32> to vector<1x16xf32>
    %cst_29 = arith.constant 1.000000e+00 : f32
    %74 = vector.broadcast %cst_29 : f32 to vector<16x1xf32>
    %cst_30 = arith.constant dense<0.000000e+00> : vector<8x1xf32>
    %75 = tpu.matmul %71, %74, %cst_30 {dimension_numbers = #tpu.dot_dimension_numbers<[1], [0], [0], [1], [0, 0, 1, 1], [], []>} : vector<8x16xf32>, vector<16x1xf32>, vector<8x1xf32> -> vector<8x1xf32>
    %76 = arith.mulf %71, %71 : vector<8x16xf32>
    %cst_31 = arith.constant dense<0.000000e+00> : vector<8x1xf32>
    %77 = tpu.matmul %76, %74, %cst_31 {dimension_numbers = #tpu.dot_dimension_numbers<[1], [0], [0], [1], [0, 0, 1, 1], [], []>} : vector<8x16xf32>, vector<16x1xf32>, vector<8x1xf32> -> vector<8x1xf32>
    %cst_32 = arith.constant 6.250000e-02 : f32
    %78 = vector.broadcast %cst_32 : f32 to vector<8x1xf32>
    %79 = arith.mulf %75, %78 : vector<8x1xf32>
    %cst_33 = arith.constant 6.250000e-02 : f32
    %80 = vector.broadcast %cst_33 : f32 to vector<8x1xf32>
    %81 = arith.mulf %77, %80 : vector<8x1xf32>
    %82 = arith.mulf %79, %79 : vector<8x1xf32>
    %83 = arith.subf %81, %82 : vector<8x1xf32>
    %cst_34 = arith.constant 0.000000e+00 : f32
    %84 = vector.broadcast %cst_34 : f32 to vector<8x1xf32>
    %85 = arith.maximumf %83, %84 : vector<8x1xf32>
    %86 = vector.broadcast %79 : vector<8x1xf32> to vector<8x16xf32>
    %87 = arith.subf %71, %86 : vector<8x16xf32>
    %cst_35 = arith.constant 9.99999974E-6 : f32
    %88 = vector.broadcast %cst_35 : f32 to vector<8x1xf32>
    %89 = arith.addf %85, %88 : vector<8x1xf32>
    %90 = math.rsqrt %89 : vector<8x1xf32>
    %91 = vector.broadcast %90 : vector<8x1xf32> to vector<8x16xf32>
    %92 = arith.mulf %87, %91 : vector<8x16xf32>
    %93 = vector.broadcast %72 : vector<1x16xf32> to vector<8x16xf32>
    %94 = arith.mulf %92, %93 : vector<8x16xf32>
    %95 = vector.broadcast %73 : vector<1x16xf32> to vector<8x16xf32>
    %96 = arith.addf %94, %95 : vector<8x16xf32>
    %cst_36 = arith.constant 0.000000e+00 : f32
    %97 = vector.broadcast %cst_36 : f32 to vector<8x16xf32>
    %98 = arith.maximumf %96, %97 : vector<8x16xf32>
    %c0_37 = arith.constant 0 : index
    %c0_38 = arith.constant 0 : index
    %99 = vector.load %arg5[%c0_37, %c0_38] : memref<16x6xf32, #tpu.memory_space<vmem>>, vector<16x6xf32>
    %cst_39 = arith.constant dense<0.000000e+00> : vector<8x6xf32>
    %100 = tpu.matmul %98, %99, %cst_39 {dimension_numbers = #tpu.dot_dimension_numbers<[1], [0], [0], [1], [0, 0, 1, 1], [], []>} : vector<8x16xf32>, vector<16x6xf32>, vector<8x6xf32> -> vector<8x6xf32>
    %c0_40 = arith.constant 0 : index
    %c0_41 = arith.constant 0 : index
    %101 = vector.load %arg8[%c0_40, %c0_41] : memref<1x6xf32, #tpu.memory_space<vmem>>, vector<1x6xf32>
    %102 = vector.broadcast %101 : vector<1x6xf32> to vector<8x6xf32>
    %103 = arith.addf %100, %102 : vector<8x6xf32>
    %104 = arith.negf %103 : vector<8x6xf32>
    %105 = math.exp %104 : vector<8x6xf32>
    %cst_42 = arith.constant 1.000000e+00 : f32
    %106 = vector.broadcast %cst_42 : f32 to vector<8x6xf32>
    %107 = arith.addf %106, %105 : vector<8x6xf32>
    %108 = arith.divf %106, %107 : vector<8x6xf32>
    %c0_43 = arith.constant 0 : index
    %c0_44 = arith.constant 0 : index
    %109 = vector.load %arg16[%c0_43, %c0_44] : memref<8x6xf32, #tpu.memory_space<vmem>>, vector<8x6xf32>
    tpu.vector_store %arg16[%c0_43, %c0_44], %108 {strides = array<i32>} : memref<8x6xf32, #tpu.memory_space<vmem>>, vector<8x6xf32>,
    %c0_45 = arith.constant 0 : index
    %c0_46 = arith.constant 0 : index
    %110 = vector.load %arg13[%c0_45, %c0_46] : memref<6x32xf32, #tpu.memory_space<vmem>>, vector<6x32xf32>
    %c0_47 = arith.constant 0 : index
    %c0_48 = arith.constant 0 : index
    %111 = vector.load %arg14[%c0_47, %c0_48] : memref<3x16xf32, #tpu.memory_space<vmem>>, vector<3x16xf32>
    %c0_49 = arith.constant 0 : index
    %c0_50 = arith.constant 0 : index
    %112 = vector.load %arg9[%c0_49, %c0_50] : memref<16x32xf32, #tpu.memory_space<vmem>>, vector<16x32xf32>
    %cst_51 = arith.constant dense<0.000000e+00> : vector<8x32xf32>
    %113 = tpu.matmul %0, %112, %cst_51 {dimension_numbers = #tpu.dot_dimension_numbers<[1], [0], [0], [1], [0, 0, 1, 1], [], []>} : vector<8x16xf32>, vector<16x32xf32>, vector<8x32xf32> -> vector<8x32xf32>
    %114 = vector.extract_strided_slice %110 {offsets = [0, 0], sizes = [1, 32], strides = [1, 1]} : vector<6x32xf32> to vector<1x32xf32>
    %115 = vector.broadcast %114 : vector<1x32xf32> to vector<8x32xf32>
    %116 = arith.addf %113, %115 : vector<8x32xf32>
    %117 = vector.extract_strided_slice %110 {offsets = [1, 0], sizes = [1, 32], strides = [1, 1]} : vector<6x32xf32> to vector<1x32xf32>
    %118 = vector.extract_strided_slice %110 {offsets = [2, 0], sizes = [1, 32], strides = [1, 1]} : vector<6x32xf32> to vector<1x32xf32>
    %cst_52 = arith.constant 1.000000e+00 : f32
    %119 = vector.broadcast %cst_52 : f32 to vector<32x1xf32>
    %cst_53 = arith.constant dense<0.000000e+00> : vector<8x1xf32>
    %120 = tpu.matmul %116, %119, %cst_53 {dimension_numbers = #tpu.dot_dimension_numbers<[1], [0], [0], [1], [0, 0, 1, 1], [], []>} : vector<8x32xf32>, vector<32x1xf32>, vector<8x1xf32> -> vector<8x1xf32>
    %121 = arith.mulf %116, %116 : vector<8x32xf32>
    %cst_54 = arith.constant dense<0.000000e+00> : vector<8x1xf32>
    %122 = tpu.matmul %121, %119, %cst_54 {dimension_numbers = #tpu.dot_dimension_numbers<[1], [0], [0], [1], [0, 0, 1, 1], [], []>} : vector<8x32xf32>, vector<32x1xf32>, vector<8x1xf32> -> vector<8x1xf32>
    %cst_55 = arith.constant 3.125000e-02 : f32
    %123 = vector.broadcast %cst_55 : f32 to vector<8x1xf32>
    %124 = arith.mulf %120, %123 : vector<8x1xf32>
    %cst_56 = arith.constant 3.125000e-02 : f32
    %125 = vector.broadcast %cst_56 : f32 to vector<8x1xf32>
    %126 = arith.mulf %122, %125 : vector<8x1xf32>
    %127 = arith.mulf %124, %124 : vector<8x1xf32>
    %128 = arith.subf %126, %127 : vector<8x1xf32>
    %cst_57 = arith.constant 0.000000e+00 : f32
    %129 = vector.broadcast %cst_57 : f32 to vector<8x1xf32>
    %130 = arith.maximumf %128, %129 : vector<8x1xf32>
    %131 = vector.broadcast %124 : vector<8x1xf32> to vector<8x32xf32>
    %132 = arith.subf %116, %131 : vector<8x32xf32>
    %cst_58 = arith.constant 9.99999974E-6 : f32
    %133 = vector.broadcast %cst_58 : f32 to vector<8x1xf32>
    %134 = arith.addf %130, %133 : vector<8x1xf32>
    %135 = math.rsqrt %134 : vector<8x1xf32>
    %136 = vector.broadcast %135 : vector<8x1xf32> to vector<8x32xf32>
    %137 = arith.mulf %132, %136 : vector<8x32xf32>
    %138 = vector.broadcast %117 : vector<1x32xf32> to vector<8x32xf32>
    %139 = arith.mulf %137, %138 : vector<8x32xf32>
    %140 = vector.broadcast %118 : vector<1x32xf32> to vector<8x32xf32>
    %141 = arith.addf %139, %140 : vector<8x32xf32>
    %cst_59 = arith.constant 0.000000e+00 : f32
    %142 = vector.broadcast %cst_59 : f32 to vector<8x32xf32>
    %143 = arith.maximumf %141, %142 : vector<8x32xf32>
    %c0_60 = arith.constant 0 : index
    %c0_61 = arith.constant 0 : index
    %144 = vector.load %arg10[%c0_60, %c0_61] : memref<32x32xf32, #tpu.memory_space<vmem>>, vector<32x32xf32>
    %cst_62 = arith.constant dense<0.000000e+00> : vector<8x32xf32>
    %145 = tpu.matmul %143, %144, %cst_62 {dimension_numbers = #tpu.dot_dimension_numbers<[1], [0], [0], [1], [0, 0, 1, 1], [], []>} : vector<8x32xf32>, vector<32x32xf32>, vector<8x32xf32> -> vector<8x32xf32>
    %146 = vector.extract_strided_slice %110 {offsets = [3, 0], sizes = [1, 32], strides = [1, 1]} : vector<6x32xf32> to vector<1x32xf32>
    %147 = vector.broadcast %146 : vector<1x32xf32> to vector<8x32xf32>
    %148 = arith.addf %145, %147 : vector<8x32xf32>
    %149 = vector.extract_strided_slice %110 {offsets = [4, 0], sizes = [1, 32], strides = [1, 1]} : vector<6x32xf32> to vector<1x32xf32>
    %150 = vector.extract_strided_slice %110 {offsets = [5, 0], sizes = [1, 32], strides = [1, 1]} : vector<6x32xf32> to vector<1x32xf32>
    %cst_63 = arith.constant 1.000000e+00 : f32
    %151 = vector.broadcast %cst_63 : f32 to vector<32x1xf32>
    %cst_64 = arith.constant dense<0.000000e+00> : vector<8x1xf32>
    %152 = tpu.matmul %148, %151, %cst_64 {dimension_numbers = #tpu.dot_dimension_numbers<[1], [0], [0], [1], [0, 0, 1, 1], [], []>} : vector<8x32xf32>, vector<32x1xf32>, vector<8x1xf32> -> vector<8x1xf32>
    %153 = arith.mulf %148, %148 : vector<8x32xf32>
    %cst_65 = arith.constant dense<0.000000e+00> : vector<8x1xf32>
    %154 = tpu.matmul %153, %151, %cst_65 {dimension_numbers = #tpu.dot_dimension_numbers<[1], [0], [0], [1], [0, 0, 1, 1], [], []>} : vector<8x32xf32>, vector<32x1xf32>, vector<8x1xf32> -> vector<8x1xf32>
    %cst_66 = arith.constant 3.125000e-02 : f32
    %155 = vector.broadcast %cst_66 : f32 to vector<8x1xf32>
    %156 = arith.mulf %152, %155 : vector<8x1xf32>
    %cst_67 = arith.constant 3.125000e-02 : f32
    %157 = vector.broadcast %cst_67 : f32 to vector<8x1xf32>
    %158 = arith.mulf %154, %157 : vector<8x1xf32>
    %159 = arith.mulf %156, %156 : vector<8x1xf32>
    %160 = arith.subf %158, %159 : vector<8x1xf32>
    %cst_68 = arith.constant 0.000000e+00 : f32
    %161 = vector.broadcast %cst_68 : f32 to vector<8x1xf32>
    %162 = arith.maximumf %160, %161 : vector<8x1xf32>
    %163 = vector.broadcast %156 : vector<8x1xf32> to vector<8x32xf32>
    %164 = arith.subf %148, %163 : vector<8x32xf32>
    %cst_69 = arith.constant 9.99999974E-6 : f32
    %165 = vector.broadcast %cst_69 : f32 to vector<8x1xf32>
    %166 = arith.addf %162, %165 : vector<8x1xf32>
    %167 = math.rsqrt %166 : vector<8x1xf32>
    %168 = vector.broadcast %167 : vector<8x1xf32> to vector<8x32xf32>
    %169 = arith.mulf %164, %168 : vector<8x32xf32>
    %170 = vector.broadcast %149 : vector<1x32xf32> to vector<8x32xf32>
    %171 = arith.mulf %169, %170 : vector<8x32xf32>
    %172 = vector.broadcast %150 : vector<1x32xf32> to vector<8x32xf32>
    %173 = arith.addf %171, %172 : vector<8x32xf32>
    %cst_70 = arith.constant 0.000000e+00 : f32
    %174 = vector.broadcast %cst_70 : f32 to vector<8x32xf32>
    %175 = arith.maximumf %173, %174 : vector<8x32xf32>
    %c0_71 = arith.constant 0 : index
    %c0_72 = arith.constant 0 : index
    %176 = vector.load %arg11[%c0_71, %c0_72] : memref<32x16xf32, #tpu.memory_space<vmem>>, vector<32x16xf32>
    %cst_73 = arith.constant dense<0.000000e+00> : vector<8x16xf32>
    %177 = tpu.matmul %175, %176, %cst_73 {dimension_numbers = #tpu.dot_dimension_numbers<[1], [0], [0], [1], [0, 0, 1, 1], [], []>} : vector<8x32xf32>, vector<32x16xf32>, vector<8x16xf32> -> vector<8x16xf32>
    %178 = vector.extract_strided_slice %111 {offsets = [0, 0], sizes = [1, 16], strides = [1, 1]} : vector<3x16xf32> to vector<1x16xf32>
    %179 = vector.broadcast %178 : vector<1x16xf32> to vector<8x16xf32>
    %180 = arith.addf %177, %179 : vector<8x16xf32>
    %181 = vector.extract_strided_slice %111 {offsets = [1, 0], sizes = [1, 16], strides = [1, 1]} : vector<3x16xf32> to vector<1x16xf32>
    %182 = vector.extract_strided_slice %111 {offsets = [2, 0], sizes = [1, 16], strides = [1, 1]} : vector<3x16xf32> to vector<1x16xf32>
    %cst_74 = arith.constant 1.000000e+00 : f32
    %183 = vector.broadcast %cst_74 : f32 to vector<16x1xf32>
    %cst_75 = arith.constant dense<0.000000e+00> : vector<8x1xf32>
    %184 = tpu.matmul %180, %183, %cst_75 {dimension_numbers = #tpu.dot_dimension_numbers<[1], [0], [0], [1], [0, 0, 1, 1], [], []>} : vector<8x16xf32>, vector<16x1xf32>, vector<8x1xf32> -> vector<8x1xf32>
    %185 = arith.mulf %180, %180 : vector<8x16xf32>
    %cst_76 = arith.constant dense<0.000000e+00> : vector<8x1xf32>
    %186 = tpu.matmul %185, %183, %cst_76 {dimension_numbers = #tpu.dot_dimension_numbers<[1], [0], [0], [1], [0, 0, 1, 1], [], []>} : vector<8x16xf32>, vector<16x1xf32>, vector<8x1xf32> -> vector<8x1xf32>
    %cst_77 = arith.constant 6.250000e-02 : f32
    %187 = vector.broadcast %cst_77 : f32 to vector<8x1xf32>
    %188 = arith.mulf %184, %187 : vector<8x1xf32>
    %cst_78 = arith.constant 6.250000e-02 : f32
    %189 = vector.broadcast %cst_78 : f32 to vector<8x1xf32>
    %190 = arith.mulf %186, %189 : vector<8x1xf32>
    %191 = arith.mulf %188, %188 : vector<8x1xf32>
    %192 = arith.subf %190, %191 : vector<8x1xf32>
    %cst_79 = arith.constant 0.000000e+00 : f32
    %193 = vector.broadcast %cst_79 : f32 to vector<8x1xf32>
    %194 = arith.maximumf %192, %193 : vector<8x1xf32>
    %195 = vector.broadcast %188 : vector<8x1xf32> to vector<8x16xf32>
    %196 = arith.subf %180, %195 : vector<8x16xf32>
    %cst_80 = arith.constant 9.99999974E-6 : f32
    %197 = vector.broadcast %cst_80 : f32 to vector<8x1xf32>
    %198 = arith.addf %194, %197 : vector<8x1xf32>
    %199 = math.rsqrt %198 : vector<8x1xf32>
    %200 = vector.broadcast %199 : vector<8x1xf32> to vector<8x16xf32>
    %201 = arith.mulf %196, %200 : vector<8x16xf32>
    %202 = vector.broadcast %181 : vector<1x16xf32> to vector<8x16xf32>
    %203 = arith.mulf %201, %202 : vector<8x16xf32>
    %204 = vector.broadcast %182 : vector<1x16xf32> to vector<8x16xf32>
    %205 = arith.addf %203, %204 : vector<8x16xf32>
    %cst_81 = arith.constant 0.000000e+00 : f32
    %206 = vector.broadcast %cst_81 : f32 to vector<8x16xf32>
    %207 = arith.maximumf %205, %206 : vector<8x16xf32>
    %c0_82 = arith.constant 0 : index
    %c0_83 = arith.constant 0 : index
    %208 = vector.load %arg12[%c0_82, %c0_83] : memref<16x1xf32, #tpu.memory_space<vmem>>, vector<16x1xf32>
    %cst_84 = arith.constant dense<0.000000e+00> : vector<8x1xf32>
    %209 = tpu.matmul %207, %208, %cst_84 {dimension_numbers = #tpu.dot_dimension_numbers<[1], [0], [0], [1], [0, 0, 1, 1], [], []>} : vector<8x16xf32>, vector<16x1xf32>, vector<8x1xf32> -> vector<8x1xf32>
    %c0_85 = arith.constant 0 : index
    %c0_86 = arith.constant 0 : index
    %210 = vector.load %arg15[%c0_85, %c0_86] : memref<1x1xf32, #tpu.memory_space<vmem>>, vector<1x1xf32>
    %211 = vector.broadcast %210 : vector<1x1xf32> to vector<8x1xf32>
    %212 = arith.addf %209, %211 : vector<8x1xf32>
    %c0_87 = arith.constant 0 : index
    %c0_88 = arith.constant 0 : index
    %213 = vector.load %arg17[%c0_87, %c0_88] : memref<8x1xf32, #tpu.memory_space<vmem>>, vector<8x1xf32>
    tpu.vector_store %arg17[%c0_87, %c0_88], %212 {strides = array<i32>} : memref<8x1xf32, #tpu.memory_space<vmem>>, vector<8x1xf32>,
    return
  }
  func.func @transform_0(%arg0: i32) -> (i32, i32) {
    %c0_i32 = arith.constant 0 : i32
    %c0_i32_0 = arith.constant 0 : i32
    return %arg0, %c0_i32 : i32, i32
  }
  func.func @transform_1(%arg0: i32) -> (i32, i32) {
    %c0_i32 = arith.constant 0 : i32
    %c0_i32_0 = arith.constant 0 : i32
    %c0_i32_1 = arith.constant 0 : i32
    return %c0_i32, %c0_i32_0 : i32, i32
  }
  func.func @transform_2(%arg0: i32) -> (i32, i32) {
    %c0_i32 = arith.constant 0 : i32
    %c0_i32_0 = arith.constant 0 : i32
    %c0_i32_1 = arith.constant 0 : i32
    return %c0_i32, %c0_i32_0 : i32, i32
  }
  func.func @transform_3(%arg0: i32) -> (i32, i32) {
    %c0_i32 = arith.constant 0 : i32
    %c0_i32_0 = arith.constant 0 : i32
    %c0_i32_1 = arith.constant 0 : i32
    return %c0_i32, %c0_i32_0 : i32, i32
  }
  func.func @transform_4(%arg0: i32) -> (i32, i32) {
    %c0_i32 = arith.constant 0 : i32
    %c0_i32_0 = arith.constant 0 : i32
    %c0_i32_1 = arith.constant 0 : i32
    return %c0_i32, %c0_i32_0 : i32, i32
  }
  func.func @transform_5(%arg0: i32) -> (i32, i32) {
    %c0_i32 = arith.constant 0 : i32
    %c0_i32_0 = arith.constant 0 : i32
    %c0_i32_1 = arith.constant 0 : i32
    return %c0_i32, %c0_i32_0 : i32, i32
  }
  func.func @transform_6(%arg0: i32) -> (i32, i32) {
    %c0_i32 = arith.constant 0 : i32
    %c0_i32_0 = arith.constant 0 : i32
    %c0_i32_1 = arith.constant 0 : i32
    return %c0_i32, %c0_i32_0 : i32, i32
  }
  func.func @transform_7(%arg0: i32) -> (i32, i32) {
    %c0_i32 = arith.constant 0 : i32
    %c0_i32_0 = arith.constant 0 : i32
    %c0_i32_1 = arith.constant 0 : i32
    return %c0_i32, %c0_i32_0 : i32, i32
  }
  func.func @transform_8(%arg0: i32) -> (i32, i32) {
    %c0_i32 = arith.constant 0 : i32
    %c0_i32_0 = arith.constant 0 : i32
    %c0_i32_1 = arith.constant 0 : i32
    return %c0_i32, %c0_i32_0 : i32, i32
  }
  func.func @transform_9(%arg0: i32) -> (i32, i32) {
    %c0_i32 = arith.constant 0 : i32
    %c0_i32_0 = arith.constant 0 : i32
    %c0_i32_1 = arith.constant 0 : i32
    return %c0_i32, %c0_i32_0 : i32, i32
  }
  func.func @transform_10(%arg0: i32) -> (i32, i32) {
    %c0_i32 = arith.constant 0 : i32
    %c0_i32_0 = arith.constant 0 : i32
    %c0_i32_1 = arith.constant 0 : i32
    return %c0_i32, %c0_i32_0 : i32, i32
  }
  func.func @transform_11(%arg0: i32) -> (i32, i32) {
    %c0_i32 = arith.constant 0 : i32
    %c0_i32_0 = arith.constant 0 : i32
    %c0_i32_1 = arith.constant 0 : i32
    return %c0_i32, %c0_i32_0 : i32, i32
  }
  func.func @transform_12(%arg0: i32) -> (i32, i32) {
    %c0_i32 = arith.constant 0 : i32
    %c0_i32_0 = arith.constant 0 : i32
    %c0_i32_1 = arith.constant 0 : i32
    return %c0_i32, %c0_i32_0 : i32, i32
  }
  func.func @transform_13(%arg0: i32) -> (i32, i32) {
    %c0_i32 = arith.constant 0 : i32
    %c0_i32_0 = arith.constant 0 : i32
    %c0_i32_1 = arith.constant 0 : i32
    return %c0_i32, %c0_i32_0 : i32, i32
  }
  func.func @transform_14(%arg0: i32) -> (i32, i32) {
    %c0_i32 = arith.constant 0 : i32
    %c0_i32_0 = arith.constant 0 : i32
    %c0_i32_1 = arith.constant 0 : i32
    return %c0_i32, %c0_i32_0 : i32, i32
  }
  func.func @transform_15(%arg0: i32) -> (i32, i32) {
    %c0_i32 = arith.constant 0 : i32
    %c0_i32_0 = arith.constant 0 : i32
    return %arg0, %c0_i32 : i32, i32
  }
  func.func @transform_16(%arg0: i32) -> (i32, i32) {
    %c0_i32 = arith.constant 0 : i32
    %c0_i32_0 = arith.constant 0 : i32
    return %arg0, %c0_i32 : i32, i32
  }
}

</mosaic_0001>

<bundles_post_ra>
// kernel: tpu_custom_call.1
= control target key start
LH: loop header
LB: loop body
LE: loop exit
PB: predicated region body
PF: predicated region fallthrough
CT: control target
= control target key end

     0   :  { %s2637_s0 = inlined_call_operand.vmem [shape: f32[8,16], index: 0, kind: input, shape index: {}]   ;;  %s2638_s1 = inlined_call_operand.vmem [shape: f32[16,32], index: 1, kind: input, shape index: {}]   ;;  %s2639_s2 = inlined_call_operand.vmem [shape: f32[32,32], index: 2, kind: input, shape index: {}]   ;;  %s2640_s3 = inlined_call_operand.vmem [shape: f32[32,16], index: 3, kind: input, shape index: {}]   ;;  %s2641_s4 = inlined_call_operand.vmem [shape: f32[16,6], index: 4, kind: input, shape index: {}]   ;;  %s2642_s5 = inlined_call_operand.vmem [shape: f32[6,32], index: 5, kind: input, shape index: {}]   ;;  %s2643_s6 = inlined_call_operand.hbm [shape: f32[3,16], index: 6, kind: input, shape index: {}]   ;;  %s2644_s7 = inlined_call_operand.vmem [shape: f32[1,6], index: 7, kind: input, shape index: {}]   ;;  %s2645_s8 = inlined_call_operand.vmem [shape: f32[16,32], index: 8, kind: input, shape index: {}]   ;;  %s2646_s9 = inlined_call_operand.vmem [shape: f32[32,32], index: 9, kind: input, shape index: {}]   ;;  %s2647_s10 = inlined_call_operand.vmem [shape: f32[32,16], index: 10, kind: input, shape index: {}]   ;;  %s2648_s11 = inlined_call_operand.vmem [shape: f32[16,1], index: 11, kind: input, shape index: {}]   ;;  %s2649_s12 = inlined_call_operand.vmem [shape: f32[6,32], index: 12, kind: input, shape index: {}]   ;;  %s2650_s13 = inlined_call_operand.vmem [shape: f32[3,16], index: 13, kind: input, shape index: {}]   ;;  %s2651_s14 = inlined_call_operand.<no memory space> [shape: f32[1,1], index: 14, kind: input, shape index: {}]   ;;  %s2652_s15 = inlined_call_operand.hbm [shape: f32[8,6], index: 15, kind: output, shape index: {0}]   ;;  %s2653_s16 = inlined_call_operand.vmem [shape: f32[8,1], index: 16, kind: output, shape index: {1}]  }
   0x1   :  { %2654 = sst [smem:[#allocation9_spill]] %s2637_s0  ;;  %v22_v0 = vstv %s2651_s14 }
   0x2   :  { %23 = vst [vmem:[#allocation2] sm:$0x1] %v22_v0 }
   0x3   :  { %24 = vsyncpa [#allocation4], 0 }
   0x4   :  { %25 = vsyncpa [#allocation5], 0  ;;  %s2252_s23 = smov [#allocation3]   ;;  %s2204_s27 = scalar_lea.hbm %s2643_s6, 64 }
   0x5   :  { %s44_s24 = sshll.u32 %s2252_s23, 4  ;;  %p2205_p0 = scmp.ne.s32.totalorder %s2643_s6, %s2204_s27  ;;  %s45_s24 = int_to_ptr.vmem [resolvable:$true] %s44_s24 }
   0x6   :  { %p2208_p1 = scmp.lt.u32.totalorder %s2204_s27, %s2643_s6 }
   0x8   :  { %p2210_p2 = pnand %p2208_p1, %p2205_p0 }
   0xa   :  { %2213 = shalt.err (!%p2210_p2)
}
   0xb   :  { %s2214_s14 = scalar_lea.vmem %s45_s24, 64  ;;  %p2219_p4 = scmp.lt.s32.totalorder %s45_s24, %s45_s24 }
   0xc   :  { %p2215_p3 = scmp.ne.s32.totalorder %s45_s24, %s2214_s14  ;;  %p2220_p5 = scmp.lt.s32.totalorder %s2214_s14, %s2214_s14 }
   0xe   :  { %p2221_p6 = por %p2220_p5, %p2219_p4 }
  0x10   :  { %p2222_p7 = pnand %p2221_p6, %p2215_p3 }
  0x12   :  { %2225 = shalt.err (!%p2222_p7)
}
  0x13   :  { %47 = dma.hbm_to_vmem [thread:$0]  %s2643_s6, 64, %s45_s24, [#allocation4]  }
  0x14   :  { %2248 = dma.done.wait [#allocation4], 64  }
  0x15   :  { %2249 = vsyncadd [#allocation4], 4294967232  ;;  %v2253_v1 = vmov 0.0|0.0   ;;  %vm2254_vm0 = vmmov 0   ;;  %v2255_v2 = vmov 0.0   ;;  %v70_v4 = vld [vmem:[%s2638_s1] sm:$0xff]  ;;  %v72_v8 = vlaneseq }
  0x16   :  { %2103 = vmatprep.subr.bf16.mxu0 %v2253_v1  ;;  %1919 = vmatprep.mubr.msk.f32.mxu0 %vm2254_vm0, %v2255_v2  ;;  %v2256_v3 = vmov 1.0|1.0   ;;  %v71_v5 = vld [vmem:[%s2638_s1 + $0x8] sm:$0xff]  ;;  %s2655_s24 = sld [smem:[#allocation9_spill]]  ;;  %vm76_vm1 = vcmask 130048   ;;  %vm150_vm2 = vcmask 261120  }
  0x17   :  { %2106 = vmatprep.subr.bf16.mxu1 %v2253_v1  ;;  %1930 = vmatprep.mubr.msk.f32.mxu1 %vm2254_vm0, %v2255_v2  ;;  %v2104_v6 = vpack.c.bf16 %v71_v5, %v70_v4  ;;  %v2389_v9 = vshrl.u32 %v72_v8, 7  ;;  %v2397_v11 = vld [vmem:[%s2642_s5] sm:$0x3f]  ;;  %v2257_v17 = vmov 0   ;;  %v329_v29 = vld [vmem:[%s2639_s2 + $0x8] sm:$0xff]  ;;  %v330_v32 = vld [vmem:[%s2639_s2 + $0x10] sm:$0xff] }
  0x18   :  { %2107 = vmatpush3.bf16.msra.mxu1 %v2256_v3  ;;  %2186 = vset.pattern.permute.xlu0 %v2257_v17  ;;  %v328_v28 = vld [vmem:[%s2639_s2] sm:$0xff]  ;;  %v331_v33 = vld [vmem:[%s2639_s2 + $0x18] sm:$0xff]  ;;  %v587_v63 = vld [vmem:[%s2640_s3 + $0x8] sm:$0xff]  ;;  %vm932_vm3 = vcmask 48128   ;;  %s2258_s5 = smov [#allocation6]  }
  0x19   :  { %2108 = vmatprep.subr.bf16.mxu1 %v2253_v1  ;;  %2105 = vmatpush3.bf16.msra.mxu0 %v2104_v6  ;;  %v2392_v10 = vsub.s32 0, %v2389_v9  ;;  %v2115_v31 = vpack.c.bf16 %v329_v29, %v328_v28  ;;  %v2118_v34 = vpack.c.bf16 %v331_v33, %v330_v32  ;;  %v2426_v35 = vsub.s32 1, %v2389_v9  ;;  %v586_v62 = vld [vmem:[%s2640_s3] sm:$0xff]  ;;  %v588_v5 = vld [vmem:[%s2640_s3 + $0x10] sm:$0xff]  ;;  %v589_v6 = vld [vmem:[%s2640_s3 + $0x18] sm:$0xff]  ;;  %s1795_s26 = sshll.u32 %s2258_s5, 4  ;;  %s1796_s26 = int_to_ptr.vmem [resolvable:$true] %s1795_s26 }
  0x1a   :  { %2110 = vmatprep.subr.bf16.mxu0 %v2253_v1  ;;  %2187 = vset.pattern.permute.xlu1 %v2257_v17  ;;  %v2429_v37 = vsub.s32 2, %v2389_v9  ;;  %v334_v46 = vsub.s32 3, %v2389_v9  ;;  %v2129_v4 = vpack.c.bf16 %v587_v63, %v586_v62  ;;  %v2132_v8 = vpack.c.bf16 %v589_v6, %v588_v5  ;;  %s2226_s27 = scalar_lea.vmem %s1796_s26, 128  ;;  %p2231_p9 = scmp.lt.s32.totalorder %s1796_s26, %s1796_s26 }
  0x1b   :  { %v75_v12 = vrot.slane %v2397_v11, %v2392_v10  ;;  %v320_v39 = vrot.slane %v2397_v11, %v2426_v35  ;;  %p2227_p8 = scmp.ne.s32.totalorder %s1796_s26, %s2226_s27  ;;  %p2232_p10 = scmp.lt.s32.totalorder %s2226_s27, %s2226_s27 }
  0x1c   :  { %2109 = vmatpush3.bf16.msra.mxu1 %v2256_v3  ;;  %v2378_v7 = vld [vmem:[%s2655_s24] sm:$0xff]  ;;  %v325_v41 = vrot.slane %v2397_v11, %v2429_v37  ;;  %v335_v47 = vrot.slane %v2397_v11, %v334_v46 }
  0x1d   :  { %2114 = vmatprep.subr.bf16.mxu1 %v2253_v1  ;;  %1920 = vmatmul.mubr.msk.f32.vlgmr.msra.gmra.mrb[0].mxu0 %vm76_vm1, %v2378_v7  ;;  %p2233_p11 = por %p2232_p10, %p2231_p9 }
  0x1e   :  { %2111 = vmatpush3.bf16.msra.mxu0 %v2256_v3  ;;  %1941 = vmatprep.mubr.msk.f32.mxu0 %vm2254_vm0, %v2255_v2 }
  0x1f   :  { %2112 = vmatprep.subr.bf16.mxu0 %v2253_v1  ;;  %p2234_p12 = pnand %p2233_p11, %p2227_p8 }
  0x22   :  { %2113 = vmatpush3.bf16.msra.mxu0 %v2256_v3 }
  0x23   :  { %2120 = vmatprep.subr.bf16.mxu0 %v2253_v1 }
  0xf0   :  { %v146_v13 = vpop.f32.mrb[0].mxu0 }
  0xf1   :  { %v147_v14 = vadd.f32 %v146_v13, %v75_v12  ;;  %v1921_v15 = vpop.f32.mrb[1].mxu0  ;;  %v577_v12 = vsub.s32 4, %v2389_v9 }
  0xf3   :  { %v224_v16 = vmul.f32 %v147_v14, %v147_v14  ;;  %1931 = vmatmul.mubr.msk.f32.vlgmr.msra.gmra.mrb[0].mxu1 %vm150_vm2, %v147_v14 }
  0xf4   :  { %1952 = vmatprep.mubr.msk.f32.mxu1 %vm2254_vm0, %v2255_v2  ;;  %2116 = vmatpush3.bf16.msra.mxu1 %v2115_v31 }
  0xf5   :  { %1942 = vmatmul.mubr.msk.f32.vlgmr.msra.gmra.mrb[2].mxu0 %vm150_vm2, %v224_v16  ;;  %2117 = vmatprep.subr.bf16.mxu1 %v2253_v1  ;;  %v578_v16 = vrot.slane %v2397_v11, %v577_v12 }
  0xf6   :  { %2121 = vmatpush3.bf16.msra.mxu0 %v2256_v3  ;;  %1963 = vmatprep.mubr.msk.f32.mxu0 %vm2254_vm0, %v2255_v2 }
  0xf7   :  { %2122 = vmatprep.subr.bf16.mxu0 %v2253_v1 }
  0xf8   :  { %2119 = vmatpush3.bf16.msra.mxu1 %v2118_v34 }
  0xf9   :  { %2124 = vmatprep.subr.bf16.mxu1 %v2253_v1 }
  0xfa   :  { %2123 = vmatpush3.bf16.msra.mxu0 %v2256_v3 }
  0xfb   :  { %2128 = vmatprep.subr.bf16.mxu0 %v2253_v1 }
 0x1c6   :  { %v220_v18 = vpop.f32.mrb[0].mxu1 }
 0x1c7   :  { %v298_v19 = vmul.f32 0.03125, %v220_v18  ;;  %v1932_v20 = vpop.f32.mrb[1].mxu1 }
 0x1c8   :  { %v294_v21 = vpop.f32.mrb[2].mxu0 }
 0x1c9   :  { %v300_v22 = vmul.f32 %v298_v19, %v298_v19  ;;  %v299_v23 = vmul.f32 0.03125, %v294_v21  ;;  %305 = vperm.xlu0 %2186, %v298_v19   ;;  %v1943_v24 = vpop.f32.mrb[3].mxu0 }
 0x1cb   :  { %v301_v25 = vsub.f32 %v299_v23, %v300_v22  ;;  %v69_v23 = vld [vmem:[#allocation3] sm:$0x7] }
 0x1cc   :  { %v593_v24 = vrot.slane %v69_v23, %v2392_v10 }
 0x1cd   :  { %v302_v26 = vmax.f32 %v301_v25, 0.0  ;;  %v937_v25 = vld [vmem:[%s2645_s8 + $0x8] sm:$0xff] }
 0x1cf   :  { %v309_v27 = vadd.f32 1e-05, %v302_v26 }
 0x1d1   :  { %2188 = vrsqrt.f32 %v309_v27 }
 0x1db   :  { %v2189_v30 = vpop.eup %2188 }
 0x1dc   :  { %313 = vperm.xlu0 %2186, %v2189_v30  }
 0x248   :  { %v306_v36 = vpop.permute.xlu0 %305 }
 0x249   :  { %v308_v38 = vsub.f32 %v147_v14, %v306_v36  ;;  %v582_v14 = vsub.s32 5, %v2389_v9 }
 0x24b   :  { %v583_v18 = vrot.slane %v2397_v11, %v582_v14  ;;  %v936_v11 = vld [vmem:[%s2645_s8] sm:$0xff] }
 0x24c   :  { %v2142_v29 = vpack.c.bf16 %v937_v25, %v936_v11  ;;  %v1189_v11 = vld [vmem:[%s2646_s9] sm:$0xff]  ;;  %v1190_v25 = vld [vmem:[%s2646_s9 + $0x8] sm:$0xff] }
 0x25b   :  { %v314_v40 = vpop.permute.xlu0 %313 }
 0x25c   :  { %v316_v42 = vmul.f32 %v314_v40, %v308_v38 }
 0x25e   :  { %v321_v43 = vmul.f32 %v320_v39, %v316_v42 }
 0x260   :  { %v326_v44 = vadd.f32 %v325_v41, %v321_v43  ;;  %v844_v43 = vld [vmem:[%s2641_s4] sm:$0xff] }
 0x262   :  { %v327_v45 = vmax.f32 %v326_v44, 0.0  ;;  %v845_v44 = vld [vmem:[%s2641_s4 + $0x8] sm:$0xff] }
 0x264   :  { %1953 = vmatmul.mubr.msk.f32.vlgmr.msra.gmra.mrb[2].mxu1 %vm150_vm2, %v327_v45  ;;  %v2139_v45 = vpack.c.bf16 %v845_v44, %v844_v43 }
 0x265   :  { %2125 = vmatpush3.bf16.msra.mxu1 %v2256_v3  ;;  %1974 = vmatprep.mubr.msk.f32.mxu1 %vm2254_vm0, %v2255_v2 }
 0x266   :  { %2126 = vmatprep.subr.bf16.mxu1 %v2253_v1 }
 0x269   :  { %2127 = vmatpush3.bf16.msra.mxu1 %v2256_v3 }
 0x26a   :  { %2134 = vmatprep.subr.bf16.mxu1 %v2253_v1 }
 0x337   :  { %v405_v48 = vpop.f32.mrb[2].mxu1 }
 0x338   :  { %v406_v49 = vadd.f32 %v405_v48, %v335_v47  ;;  %v1954_v50 = vpop.f32.mrb[3].mxu1  ;;  %v2513_v47 = vld [vmem:[%s2649_s12] sm:$0x3f] }
 0x33a   :  { %v482_v51 = vmul.f32 %v406_v49, %v406_v49  ;;  %1964 = vmatmul.mubr.msk.f32.vlgmr.msra.gmra.mrb[4].mxu0 %vm150_vm2, %v406_v49 }
 0x33b   :  { %1985 = vmatprep.mubr.msk.f32.mxu0 %vm2254_vm0, %v2255_v2  ;;  %2130 = vmatpush3.bf16.msra.mxu0 %v2129_v4 }
 0x33c   :  { %1975 = vmatmul.mubr.msk.f32.vlgmr.msra.gmra.mrb[4].mxu1 %vm150_vm2, %v482_v51  ;;  %2131 = vmatprep.subr.bf16.mxu0 %v2253_v1 }
 0x33d   :  { %2135 = vmatpush3.bf16.msra.mxu1 %v2256_v3  ;;  %1992 = vmatprep.mubr.msk.f32.mxu1 %vm2254_vm0, %v2255_v2 }
 0x33e   :  { %2138 = vmatprep.subr.bf16.mxu1 %v2253_v1 }
 0x33f   :  { %2133 = vmatpush3.bf16.msra.mxu0 %v2132_v8 }
 0x340   :  { %2136 = vmatprep.subr.bf16.mxu0 %v2253_v1 }
 0x40d   :  { %v478_v52 = vpop.f32.mrb[4].mxu0 }
 0x40e   :  { %v556_v53 = vmul.f32 0.03125, %v478_v52  ;;  %v1965_v54 = vpop.f32.mrb[5].mxu0 }
 0x40f   :  { %v552_v55 = vpop.f32.mrb[4].mxu1 }
 0x410   :  { %v558_v56 = vmul.f32 %v556_v53, %v556_v53  ;;  %v557_v57 = vmul.f32 0.03125, %v552_v55  ;;  %v1976_v58 = vpop.f32.mrb[5].mxu1  ;;  %563 = vperm.xlu1 %2187, %v556_v53   ;;  %v836_v55 = vrot.slane %v69_v23, %v2426_v35 }
 0x412   :  { %v559_v59 = vsub.f32 %v557_v57, %v558_v56  ;;  %v841_v57 = vrot.slane %v69_v23, %v2429_v37 }
 0x414   :  { %v560_v60 = vmax.f32 %v559_v59, 0.0 }
 0x416   :  { %v567_v61 = vadd.f32 1e-05, %v560_v60 }
 0x418   :  { %2190 = vrsqrt.f32 %v567_v61 }
 0x422   :  { %v2191_v0 = vpop.eup %2190 }
 0x423   :  { %571 = vperm.xlu1 %2187, %v2191_v0   ;;  %v1817_v0 = vld [vmem:[%s2644_s7] ss:$0 sm:$0xff] }
 0x48f   :  { %v564_v13 = vpop.permute.xlu1 %563 }
 0x490   :  { %v566_v15 = vsub.f32 %v406_v49, %v564_v13  ;;  %v941_v49 = vrot.slane %v2513_v47, %v2392_v10 }
 0x4a2   :  { %v572_v17 = vpop.permute.xlu1 %571 }
 0x4a3   :  { %v574_v19 = vmul.f32 %v572_v17, %v566_v15 }
 0x4a5   :  { %v579_v20 = vmul.f32 %v578_v16, %v574_v19 }
 0x4a7   :  { %v584_v21 = vadd.f32 %v583_v18, %v579_v20 }
 0x4a9   :  { %v585_v22 = vmax.f32 %v584_v21, 0.0 }
 0x4ab   :  { %1986 = vmatmul.mubr.msk.f32.vlgmr.msra.gmra.mrb[6].mxu0 %vm150_vm2, %v585_v22 }
 0x4ac   :  { %2137 = vmatpush3.bf16.msra.mxu0 %v2256_v3  ;;  %1999 = vmatprep.mubr.msk.f32.mxu0 %vm2254_vm0, %v2255_v2 }
 0x4ad   :  { %2141 = vmatprep.subr.bf16.mxu0 %v2253_v1 }
 0x57e   :  { %v663_v26 = vpop.f32.mrb[6].mxu0 }
 0x57f   :  { %v664_v27 = vadd.f32 %v663_v26, %v593_v24  ;;  %v1987_v28 = vpop.f32.mrb[7].mxu0 }
 0x580   :  { %v1191_v28 = vld [vmem:[%s2646_s9 + $0x10] sm:$0xff] }
 0x581   :  { %v740_v30 = vmul.f32 %v664_v27, %v664_v27  ;;  %1993 = vmatmul.mubr.msk.f32.vlgmr.msra.gmra.mrb[6].mxu1 %vm76_vm1, %v664_v27 }
 0x582   :  { %2006 = vmatprep.mubr.msk.f32.mxu1 %vm2254_vm0, %v2255_v2  ;;  %2140 = vmatpush3.bf16.msra.mxu1 %v2139_v45 }
 0x583   :  { %2000 = vmatmul.mubr.msk.f32.vlgmr.msra.gmra.mrb[8].mxu0 %vm76_vm1, %v740_v30  ;;  %2144 = vmatprep.subr.bf16.mxu1 %v2253_v1 }
 0x584   :  { %2143 = vmatpush3.bf16.msra.mxu0 %v2142_v29  ;;  %2013 = vmatprep.mubr.msk.f32.mxu0 %vm2254_vm0, %v2255_v2  ;;  %v1192_v29 = vld [vmem:[%s2646_s9 + $0x18] sm:$0xff] }
 0x585   :  { %2148 = vmatprep.subr.bf16.mxu0 %v2253_v1  ;;  %v2156_v30 = vpack.c.bf16 %v1192_v29, %v1191_v28 }
 0x587   :  { %2014 = vmatmul.mubr.msk.f32.vlgmr.msra.gmra.mrb[10].mxu0 %vm76_vm1, %v2378_v7 }
 0x588   :  { %2149 = vmatpush3.bf16.msra.mxu0 %v2256_v3  ;;  %2035 = vmatprep.mubr.msk.f32.mxu0 %vm2254_vm0, %v2255_v2 }
 0x589   :  { %2150 = vmatprep.subr.bf16.mxu0 %v2253_v1 }
 0x58c   :  { %2151 = vmatpush3.bf16.msra.mxu0 %v2256_v3 }
 0x58d   :  { %2158 = vmatprep.subr.bf16.mxu0 %v2253_v1 }
 0x654   :  { %v736_v31 = vpop.f32.mrb[6].mxu1 }
 0x655   :  { %v814_v32 = vmul.f32 0.0625, %v736_v31  ;;  %v1994_v33 = vpop.f32.mrb[7].mxu1 }
 0x656   :  { %v810_v34 = vpop.f32.mrb[8].mxu0  ;;  %v1181_v33 = vrot.slane %v2513_v47, %v2426_v35 }
 0x657   :  { %v816_v36 = vmul.f32 %v814_v32, %v814_v32  ;;  %v815_v38 = vmul.f32 0.0625, %v810_v34  ;;  %821 = vperm.xlu0 %2186, %v814_v32   ;;  %v2001_v39 = vpop.f32.mrb[9].mxu0 }
 0x659   :  { %v817_v7 = vsub.f32 %v815_v38, %v816_v36  ;;  %v1186_v36 = vrot.slane %v2513_v47, %v2429_v37 }
 0x65a   :  { %v1008_v48 = vpop.f32.mrb[10].mxu0 }
 0x65b   :  { %v818_v40 = vmax.f32 %v817_v7, 0.0  ;;  %v2015_v50 = vpop.f32.mrb[11].mxu0  ;;  %v2517_v51 = vadd.f32 %v1008_v48, %v941_v49 }
 0x65d   :  { %v825_v41 = vadd.f32 1e-05, %v818_v40  ;;  %v1085_v52 = vmul.f32 %v2517_v51, %v2517_v51 }
 0x65f   :  { %2192 = vrsqrt.f32 %v825_v41  ;;  %2036 = vmatmul.mubr.msk.f32.vlgmr.msra.gmra.mrb[12].mxu0 %vm150_vm2, %v1085_v52  ;;  %v1196_v41 = vrot.slane %v2513_v47, %v334_v46 }
 0x660   :  { %2159 = vmatpush3.bf16.msra.mxu0 %v2256_v3  ;;  %2057 = vmatprep.mubr.msk.f32.mxu0 %vm2254_vm0, %v2255_v2 }
 0x661   :  { %2160 = vmatprep.subr.bf16.mxu0 %v2253_v1 }
 0x664   :  { %2161 = vmatpush3.bf16.msra.mxu0 %v2256_v3 }
 0x665   :  { %2166 = vmatprep.subr.bf16.mxu0 %v2253_v1 }
 0x669   :  { %v2193_v42 = vpop.eup %2192 }
 0x66a   :  { %829 = vperm.xlu1 %2187, %v2193_v42  }
 0x6d6   :  { %v822_v53 = vpop.permute.xlu0 %821 }
 0x6d7   :  { %v824_v54 = vsub.f32 %v664_v27, %v822_v53  ;;  %v2153_v27 = vpack.c.bf16 %v1190_v25, %v1189_v11 }
 0x6e9   :  { %v830_v56 = vpop.permute.xlu1 %829 }
 0x6ea   :  { %v832_v58 = vmul.f32 %v830_v56, %v824_v54 }
 0x6ec   :  { %v837_v59 = vmul.f32 %v836_v55, %v832_v58  ;;  %v1448_v58 = vld [vmem:[%s2647_s10 + $0x8] sm:$0xff] }
 0x6ee   :  { %v842_v60 = vadd.f32 %v841_v57, %v837_v59  ;;  %v1447_v57 = vld [vmem:[%s2647_s10] sm:$0xff] }
 0x6f0   :  { %v843_v61 = vmax.f32 %v842_v60, 0.0  ;;  %v2167_v60 = vpack.c.bf16 %v1448_v58, %v1447_v57 }
 0x6f2   :  { %2007 = vmatmul.mubr.msk.f32.vlgmr.msra.gmra.mrb[8].mxu1 %vm76_vm1, %v843_v61  ;;  %v1449_v61 = vld [vmem:[%s2647_s10 + $0x10] sm:$0xff] }
 0x6f3   :  { %2145 = vmatpush3.bf16.msra.mxu1 %v2256_v3  ;;  %2024 = vmatprep.mubr.msk.f32.mxu1 %vm2254_vm0, %v2255_v2 }
 0x6f4   :  { %2146 = vmatprep.subr.bf16.mxu1 %v2253_v1 }
 0x6f7   :  { %2147 = vmatpush3.bf16.msra.mxu1 %v2256_v3 }
 0x6f8   :  { %2152 = vmatprep.subr.bf16.mxu1 %v2253_v1 }
 0x6fa   :  { %2025 = vmatmul.mubr.msk.f32.vlgmr.msra.gmra.mrb[10].mxu1 %vm150_vm2, %v2517_v51 }
 0x6fb   :  { %2046 = vmatprep.mubr.msk.f32.mxu1 %vm2254_vm0, %v2255_v2  ;;  %2154 = vmatpush3.bf16.msra.mxu1 %v2153_v27  ;;  %v1706_v27 = vld [vmem:[%s2648_s11 + $0x8] sm:$0xff] }
 0x6fc   :  { %2155 = vmatprep.subr.bf16.mxu1 %v2253_v1 }
 0x6ff   :  { %2157 = vmatpush3.bf16.msra.mxu1 %v2156_v30 }
 0x700   :  { %2162 = vmatprep.subr.bf16.mxu1 %v2253_v1 }
 0x732   :  { %v1155_v62 = vpop.f32.mrb[12].mxu0 }
 0x733   :  { %v2037_v63 = vpop.f32.mrb[13].mxu0  ;;  %v1160_v17 = vmul.f32 0.03125, %v1155_v62  ;;  %v1450_v62 = vld [vmem:[%s2647_s10 + $0x18] sm:$0xff] }
 0x734   :  { %v2170_v63 = vpack.c.bf16 %v1450_v62, %v1449_v61 }
 0x7c5   :  { %v922_v4 = vpop.f32.mrb[8].mxu1 }
 0x7c6   :  { %v923_v5 = vadd.f32 %v1817_v0, %v922_v4  ;;  %v2008_v6 = vpop.f32.mrb[9].mxu1 }
 0x7c8   :  { %v1819_v8 = vmul.f32 -1.442695, %v923_v5  ;;  %v1439_v5 = vrot.slane %v2513_v47, %v577_v12 }
 0x7ca   :  { %2194 = vpow2.f32 %v1819_v8  ;;  %v1444_v8 = vrot.slane %v2513_v47, %v582_v14 }
 0x7cd   :  { %v1081_v13 = vpop.f32.mrb[10].mxu1 }
 0x7ce   :  { %v1159_v15 = vmul.f32 0.03125, %v1081_v13  ;;  %v2026_v16 = vpop.f32.mrb[11].mxu1 }
 0x7d0   :  { %v1161_v18 = vmul.f32 %v1159_v15, %v1159_v15  ;;  %1166 = vperm.xlu0 %2186, %v1159_v15  }
 0x7d2   :  { %v1162_v19 = vsub.f32 %v1160_v17, %v1161_v18 }
 0x7d4   :  { %v2195_v20 = vpop.eup %2194  ;;  %v1163_v21 = vmax.f32 %v1162_v19, 0.0 }
 0x7d5   :  { %v929_v22 = vadd.f32 1.0, %v2195_v20 }
 0x7d6   :  { %v1170_v23 = vadd.f32 1e-05, %v1163_v21 }
 0x7d7   :  { %2196 = vrcp.f32 %v929_v22 }
 0x7d8   :  { %2198 = vrsqrt.f32 %v1170_v23 }
 0x7e1   :  { %v2197_v24 = vpop.eup %2196 }
 0x7e2   :  { %v2199_v26 = vpop.eup %2198  ;;  %933 = vst.msk [vmem:[#allocation6] sm:$0xff] %vm932_vm3, %v2197_v24 }
 0x7e3   :  { %1174 = vperm.xlu1 %2187, %v2199_v26  }
 0x84f   :  { %v1167_v31 = vpop.permute.xlu0 %1166 }
 0x850   :  { %v1169_v32 = vsub.f32 %v2517_v51, %v1167_v31 }
 0x862   :  { %v1175_v34 = vpop.permute.xlu1 %1174 }
 0x863   :  { %v1177_v38 = vmul.f32 %v1175_v34, %v1169_v32 }
 0x865   :  { %v1182_v39 = vmul.f32 %v1181_v33, %v1177_v38 }
 0x867   :  { %v1187_v7 = vadd.f32 %v1186_v36, %v1182_v39 }
 0x869   :  { %v1188_v40 = vmax.f32 %v1187_v7, 0.0 }
 0x86b   :  { %2047 = vmatmul.mubr.msk.f32.vlgmr.msra.gmra.mrb[12].mxu1 %vm150_vm2, %v1188_v40 }
 0x86c   :  { %2163 = vmatpush3.bf16.msra.mxu1 %v2256_v3  ;;  %2068 = vmatprep.mubr.msk.f32.mxu1 %vm2254_vm0, %v2255_v2 }
 0x86d   :  { %2164 = vmatprep.subr.bf16.mxu1 %v2253_v1 }
 0x870   :  { %2165 = vmatpush3.bf16.msra.mxu1 %v2256_v3 }
 0x871   :  { %2172 = vmatprep.subr.bf16.mxu1 %v2253_v1 }
 0x93e   :  { %v1266_v42 = vpop.f32.mrb[12].mxu1 }
 0x93f   :  { %v1267_v43 = vadd.f32 %v1266_v42, %v1196_v41  ;;  %v2048_v44 = vpop.f32.mrb[13].mxu1 }
 0x941   :  { %v1343_v45 = vmul.f32 %v1267_v43, %v1267_v43  ;;  %2058 = vmatmul.mubr.msk.f32.vlgmr.msra.gmra.mrb[14].mxu0 %vm150_vm2, %v1267_v43 }
 0x942   :  { %2079 = vmatprep.mubr.msk.f32.mxu0 %vm2254_vm0, %v2255_v2  ;;  %2168 = vmatpush3.bf16.msra.mxu0 %v2167_v60 }
 0x943   :  { %2069 = vmatmul.mubr.msk.f32.vlgmr.msra.gmra.mrb[14].mxu1 %vm150_vm2, %v1343_v45  ;;  %2169 = vmatprep.subr.bf16.mxu0 %v2253_v1 }
 0x944   :  { %2173 = vmatpush3.bf16.msra.mxu1 %v2256_v3  ;;  %2086 = vmatprep.mubr.msk.f32.mxu1 %vm2254_vm0, %v2255_v2 }
 0x945   :  { %2176 = vmatprep.subr.bf16.mxu1 %v2253_v1 }
 0x946   :  { %2171 = vmatpush3.bf16.msra.mxu0 %v2170_v63 }
 0x947   :  { %2174 = vmatprep.subr.bf16.mxu0 %v2253_v1  ;;  %v935_v1 = vld [vmem:[%s2650_s13] sm:$0x7] }
 0x948   :  { %v1454_v12 = vrot.slane %v935_v1, %v2392_v10  ;;  %v1697_v31 = vrot.slane %v935_v1, %v2426_v35  ;;  %v1702_v33 = vrot.slane %v935_v1, %v2429_v37 }
 0xa14   :  { %v1339_v48 = vpop.f32.mrb[14].mxu0 }
 0xa15   :  { %v1417_v46 = vmul.f32 0.03125, %v1339_v48  ;;  %v2059_v49 = vpop.f32.mrb[15].mxu0 }
 0xa16   :  { %v1413_v50 = vpop.f32.mrb[14].mxu1 }
 0xa17   :  { %v1419_v51 = vmul.f32 %v1417_v46, %v1417_v46  ;;  %v1418_v52 = vmul.f32 0.03125, %v1413_v50  ;;  %v2070_v53 = vpop.f32.mrb[15].mxu1  ;;  %1424 = vperm.xlu0 %2186, %v1417_v46  }
 0xa19   :  { %v1420_v54 = vsub.f32 %v1418_v52, %v1419_v51 }
 0xa1b   :  { %v1421_v55 = vmax.f32 %v1420_v54, 0.0 }
 0xa1d   :  { %v1428_v56 = vadd.f32 1e-05, %v1421_v55 }
 0xa1f   :  { %2200 = vrsqrt.f32 %v1428_v56 }
 0xa29   :  { %v2201_v59 = vpop.eup %2200 }
 0xa2a   :  { %1432 = vperm.xlu1 %2187, %v2201_v59  }
 0xa96   :  { %v1425_v0 = vpop.permute.xlu0 %1424 }
 0xa97   :  { %v1427_v4 = vsub.f32 %v1267_v43, %v1425_v0 }
 0xaa9   :  { %v1433_v6 = vpop.permute.xlu1 %1432 }
 0xaaa   :  { %v1435_v13 = vmul.f32 %v1433_v6, %v1427_v4 }
 0xaac   :  { %v1440_v15 = vmul.f32 %v1439_v5, %v1435_v13 }
 0xaae   :  { %v1445_v16 = vadd.f32 %v1444_v8, %v1440_v15 }
 0xab0   :  { %v1446_v17 = vmax.f32 %v1445_v16, 0.0 }
 0xab2   :  { %2080 = vmatmul.mubr.msk.f32.vlgmr.msra.gmra.mrb[16].mxu0 %vm150_vm2, %v1446_v17 }
 0xab3   :  { %2175 = vmatpush3.bf16.msra.mxu0 %v2256_v3  ;;  %2093 = vmatprep.mubr.msk.f32.mxu0 %vm2254_vm0, %v2255_v2 }
 0xb85   :  { %v1524_v9 = vpop.f32.mrb[16].mxu0 }
 0xb86   :  { %v1525_v18 = vadd.f32 %v1524_v9, %v1454_v12  ;;  %v2081_v14 = vpop.f32.mrb[17].mxu0 }
 0xb88   :  { %v1601_v47 = vmul.f32 %v1525_v18, %v1525_v18  ;;  %2087 = vmatmul.mubr.msk.f32.vlgmr.msra.gmra.mrb[16].mxu1 %vm76_vm1, %v1525_v18 }
 0xb89   :  { %2100 = vmatprep.mubr.msk.f32.mxu1 %vm2254_vm0, %v2255_v2  ;;  %v1705_v2 = vld [vmem:[%s2648_s11] sm:$0xff] }
 0xb8a   :  { %2094 = vmatmul.mubr.msk.f32.vlgmr.msra.gmra.mrb[18].mxu0 %vm76_vm1, %v1601_v47  ;;  %v2177_v28 = vpack.c.bf16 %v1706_v27, %v1705_v2 }
 0xb8c   :  { %2178 = vmatpush3.bf16.msra.mxu1 %v2177_v28 }
 0xc5b   :  { %v1597_v3 = vpop.f32.mrb[16].mxu1 }
 0xc5c   :  { %v1675_v19 = vmul.f32 0.0625, %v1597_v3  ;;  %v2088_v20 = vpop.f32.mrb[17].mxu1 }
 0xc5d   :  { %v1671_v21 = vpop.f32.mrb[18].mxu0 }
 0xc5e   :  { %v1677_v22 = vmul.f32 %v1675_v19, %v1675_v19  ;;  %v1676_v23 = vmul.f32 0.0625, %v1671_v21  ;;  %1682 = vperm.xlu0 %2186, %v1675_v19   ;;  %v2095_v24 = vpop.f32.mrb[19].mxu0 }
 0xc60   :  { %v1678_v10 = vsub.f32 %v1676_v23, %v1677_v22 }
 0xc62   :  { %v1679_v11 = vmax.f32 %v1678_v10, 0.0 }
 0xc64   :  { %v1686_v25 = vadd.f32 1e-05, %v1679_v11 }
 0xc66   :  { %2202 = vrsqrt.f32 %v1686_v25 }
 0xc70   :  { %v2203_v26 = vpop.eup %2202 }
 0xc71   :  { %1690 = vperm.xlu1 %2187, %v2203_v26  }
 0xcdd   :  { %v1683_v29 = vpop.permute.xlu0 %1682 }
 0xcde   :  { %v1685_v30 = vsub.f32 %v1525_v18, %v1683_v29 }
 0xcf0   :  { %v1691_v32 = vpop.permute.xlu1 %1690 }
 0xcf1   :  { %v1693_v34 = vmul.f32 %v1691_v32, %v1685_v30 }
 0xcf3   :  { %v1698_v36 = vmul.f32 %v1697_v31, %v1693_v34 }
 0xcf5   :  { %v1703_v38 = vadd.f32 %v1702_v33, %v1698_v36 }
 0xcf7   :  { %v1704_v39 = vmax.f32 %v1703_v38, 0.0 }
 0xcf9   :  { %2101 = vmatmul.mubr.msk.f32.vlgmr.msra.gmra.mrb[18].mxu1 %vm76_vm1, %v1704_v39 }
 0xcfa   :  { %2237 = shalt.err (!%p2234_p12)
}
 0xcfb   :  { %s2238_s4 = scalar_lea.hbm %s2652_s15, 128 }
 0xcfc   :  { %p2239_p13 = scmp.ne.s32.totalorder %s2652_s15, %s2238_s4  ;;  %p2242_p0 = scmp.lt.u32.totalorder %s2238_s4, %s2652_s15 }
 0xcfe   :  { %p2244_p1 = pnand %p2242_p0, %p2239_p13 }
 0xd00   :  { %2247 = shalt.err (!%p2244_p1)
}
 0xd01   :  { %1798 = dma.vmem_to_hbm [thread:$0]  %s1796_s26, 128, %s2652_s15, [#allocation5]   ;;  %v1829_v35 = vld [vmem:[#allocation2] ss:$0 sm:$0xff]  ;;  %vm1787_vm4 = vcmask 7168  }
 0xdcc   :  { %v1783_v37 = vpop.f32.mrb[18].mxu1 }
 0xdcd   :  { %v1784_v7 = vadd.f32 %v1829_v35, %v1783_v37  ;;  %v2102_v40 = vpop.f32.mrb[19].mxu1 }
 0xdcf   :  { %1788 = vst.msk [vmem:[%s2653_s16] sm:$0xff] %vm1787_vm4, %v1784_v7 }
 0xdd0   :  { %2250 = dma.done.wait [#allocation5], 128  }
 0xdd1   :  { %2251 = vsyncadd [#allocation5], 4294967168 }
 0xdd2   :  { %1806 = vsyncpa [#allocation4], 1 }
 0xdd3   :  { %1807 = vsyncpa [#allocation5], 1 }

</bundles_post_ra>
